<compile_context>
chip_gen: v5e
topology: v5e:2x2
jax: 0.10.0
libtpu: 0.0.40
codegen_flags: <defaults>
</compile_context>

<pallas_src>
import jax
import jax.numpy as jnp
from jax.experimental import pallas as pl
from jax.experimental.pallas import tpu as pltpu


# --------------------------------------------------------------------------------------
# Kernels
# --------------------------------------------------------------------------------------
def se_fused_kernel(x_ref, w1_ref, b1_ref, w2_ref, b2_ref, o_ref):
    """Fused SE: global-average-pool + 2-layer FC + sigmoid + scale, one pass over x.

    x_ref : (Bt, C, HW)  NCHW-native tile (HW on lanes, C on sublanes)
    w1_ref: (C, hidden)  fc1 weight pre-transposed, 1/HW pre-folded (f32)
    b1_ref: (1, hidden)  f32
    w2_ref: (hidden, C)  fc2 weight pre-transposed (f32)
    b2_ref: (1, C)       f32
    o_ref : (Bt, C, HW)
    """
    # Global spatial sum (lane/XLU reduction), accumulated in f32.  1/HW lives in w1.
    pooled = jnp.sum(x_ref[...].astype(jnp.float32), axis=2)            # (Bt, C)
    h = jnp.dot(pooled, w1_ref[...], preferred_element_type=jnp.float32) + b1_ref[...]
    h = jnp.maximum(h, 0.0)                                              # ReLU
    z = jnp.dot(h, w2_ref[...], preferred_element_type=jnp.float32) + b2_ref[...]
    s = jax.nn.sigmoid(z)                                                # (Bt, C) f32
    # Per-(b, c) scale broadcast along lanes; multiply in x's dtype (bf16 stays bf16).
    o_ref[...] = (x_ref[...] * s.astype(o_ref.dtype)[:, :, None]).astype(o_ref.dtype)


def pool_kernel(x_ref, sum_ref):
    """Tiled global spatial sum (two-pass fallback, pass 1).

    x_ref  : (Bt, C, HWt)
    sum_ref: (Bt, C, 1) f32 -- resident output accumulator across the HW grid axis.
    NOTE: correctness requires the HW (reduction) axis to be the innermost grid axis and
    marked "arbitrary" (the output block index is constant along it).
    """
    @pl.when(pl.program_id(1) == 0)
    def _init():
        sum_ref[...] = jnp.zeros_like(sum_ref)

    sum_ref[...] += jnp.sum(x_ref[...].astype(jnp.float32), axis=2, keepdims=True)


def apply_scale_kernel(x_ref, s_ref, o_ref):
    """Per-(batch, channel) scaling (two-pass fallback, pass 2); lane-dense over HW.

    x_ref: (Bt, C, HWt)   s_ref: (Bt, C, 1) f32   o_ref: (Bt, C, HWt)
    """
    o_ref[...] = (x_ref[...] * s_ref[...].astype(o_ref.dtype)).astype(o_ref.dtype)


# --------------------------------------------------------------------------------------
# Tiling helpers
# --------------------------------------------------------------------------------------
def _divisors_desc(n):
    return [d for d in range(n, 0, -1) if n % d == 0]


def _pick_fused_batch_tile(b, slab_bytes_per_b, target_bytes):
    """Largest divisor of B whose x tile fits the budget while keeping >= 2 grid points
    (when B >= 2), so the single 'parallel' axis shards over both v7x TensorCores."""
    for d in _divisors_desc(b):
        if d * slab_bytes_per_b <= target_bytes and (b // d >= 2 or b == 1):
            return d
    return 1


def _pick_hw_tile(hw, bytes_per_hw_col, target_bytes):
    """Largest HW tile dividing HW, multiple of 128 (lane-dense), fitting the budget;
    falls back to the smallest 128-multiple divisor, then to full HW."""
    mults = [d for d in _divisors_desc(hw) if d % 128 == 0]
    for d in mults:
        if d * bytes_per_hw_col <= target_bytes:
            return d
    return mults[-1] if mults else hw


# --------------------------------------------------------------------------------------
# Wrapper
# --------------------------------------------------------------------------------------
def squeeze_excitation(x, w1, b1, w2, b2, *, force_two_pass=False,
                       batch_tile=None, hw_tile=None):
    """SE block.  x: (B, C, H, W).
    w1: (hidden, C), b1: (hidden,), w2: (C, hidden), b2: (C,)
    (PyTorch nn.Linear convention: weight shape = (out_features, in_features))."""
    B, C, H, W = x.shape
    hidden = w1.shape[0]
    HW = H * W
    itemsize = jnp.dtype(x.dtype).itemsize

    # NCHW-native lane-dense view: merge the contiguous (H, W) dims only (free, no relayout).
    x3 = x.reshape(B, C, HW)

    # Pre-arranged FC params: transposed once, 1/HW folded into w1, f32 math.
    w1_ch = (jnp.transpose(w1) * (1.0 / HW)).astype(jnp.float32)   # (C, hidden)
    b1_row = b1.reshape(1, hidden).astype(jnp.float32)             # (1, hidden)
    w2_hc = jnp.transpose(w2).astype(jnp.float32)                  # (hidden, C)
    b2_row = b2.reshape(1, C).astype(jnp.float32)                  # (1, C)

    # Per-grid-step x-tile budget; with double-buffered in + out (~4x) plus tiny weights
    # this stays well under v7x's 64 MiB physical VMEM (v5e/v6e have 128 MiB).
    tile_budget = 6 * 1024 * 1024
    vmem_limit = 48 * 1024 * 1024
    slab_per_b = C * HW * itemsize

    if not force_two_pass and slab_per_b <= tile_budget:
        # ---------------- Fused single pass: x read once, written once ----------------
        Bt = batch_tile if batch_tile is not None else _pick_fused_batch_tile(
            B, slab_per_b, tile_budget)
        assert B % Bt == 0, (B, Bt)
        grid = (B // Bt,)
        out3 = pl.pallas_call(
            se_fused_kernel,
            out_shape=jax.ShapeDtypeStruct((B, C, HW), x.dtype),
            grid_spec=pltpu.PrefetchScalarGridSpec(
                num_scalar_prefetch=0,
                grid=grid,
                in_specs=[
                    pl.BlockSpec((Bt, C, HW), lambda bi: (bi, 0, 0)),
                    pl.BlockSpec((C, hidden), lambda bi: (0, 0)),
                    pl.BlockSpec((1, hidden), lambda bi: (0, 0)),
                    pl.BlockSpec((hidden, C), lambda bi: (0, 0)),
                    pl.BlockSpec((1, C), lambda bi: (0, 0)),
                ],
                out_specs=pl.BlockSpec((Bt, C, HW), lambda bi: (bi, 0, 0)),
            ),
            compiler_params=pltpu.CompilerParams(
                dimension_semantics=("parallel",),
                vmem_limit_bytes=vmem_limit),
        )(x3, w1_ch, b1_row, w2_hc, b2_row)
        return out3.reshape(B, C, H, W)

    # ---------- Two-pass fallback: tiled pool -> tiny XLA FC -> tiled apply ----------
    Bt = batch_tile if batch_tile is not None else 1
    assert B % Bt == 0, (B, Bt)
    HWt = hw_tile if hw_tile is not None else _pick_hw_tile(
        HW, Bt * C * itemsize, 4 * 1024 * 1024)
    assert HW % HWt == 0, (HW, HWt)
    assert HWt % 128 == 0 or HWt == HW, HWt
    grid = (B // Bt, HW // HWt)

    # Pass 1: tiled global spatial sums.  HW (reduction) axis is innermost + "arbitrary".
    sums = pl.pallas_call(
        pool_kernel,
        out_shape=jax.ShapeDtypeStruct((B, C, 1), jnp.float32),
        grid_spec=pltpu.PrefetchScalarGridSpec(
            num_scalar_prefetch=0,
            grid=grid,
            in_specs=[pl.BlockSpec((Bt, C, HWt), lambda bi, hi: (bi, 0, hi))],
            out_specs=pl.BlockSpec((Bt, C, 1), lambda bi, hi: (bi, 0, 0)),
        ),
        compiler_params=pltpu.CompilerParams(
            dimension_semantics=("parallel", "arbitrary"),
            vmem_limit_bytes=vmem_limit),
    )(x3)

    # Tiny (B, C) FC in plain XLA (1/HW already folded into w1_ch).
    pooled_sum = sums[:, :, 0]                                     # (B, C) f32
    h = jnp.maximum(pooled_sum @ w1_ch + b1_row, 0.0)
    scale = jax.nn.sigmoid(h @ w2_hc + b2_row)[:, :, None]         # (B, C, 1) f32

    # Pass 2: fully parallel lane-dense apply.
    out3 = pl.pallas_call(
        apply_scale_kernel,
        out_shape=jax.ShapeDtypeStruct((B, C, HW), x.dtype),
        grid_spec=pltpu.PrefetchScalarGridSpec(
            num_scalar_prefetch=0,
            grid=grid,
            in_specs=[
                pl.BlockSpec((Bt, C, HWt), lambda bi, hi: (bi, 0, hi)),
                pl.BlockSpec((Bt, C, 1), lambda bi, hi: (bi, 0, 0)),
            ],
            out_specs=pl.BlockSpec((Bt, C, HWt), lambda bi, hi: (bi, 0, hi)),
        ),
        compiler_params=pltpu.CompilerParams(
            dimension_semantics=("parallel", "parallel"),
            vmem_limit_bytes=vmem_limit),
    )(x3, scale)
    return out3.reshape(B, C, H, W)


# --------------------------------------------------------------------------------------
# Pure-JAX reference (matches the PyTorch forward)
# --------------------------------------------------------------------------------------
def reference(x, w1, b1, w2, b2):
    y = jnp.mean(x, axis=(2, 3))                       # (B, C)
    y = jnp.maximum(y @ w1.T + b1, 0.0)                # (B, hidden)
    y = jax.nn.sigmoid(y @ w2.T + b2)                  # (B, C)
    return x * y[:, :, None, None]


if __name__ == "__main__":
    # Small shapes consistent with ydecoder2's SE blocks (out_c in {256,128,64,32}, ratio=8).
    B, C, H, W = 2, 64, 16, 16
    ratio = 8
    hidden = C // ratio                                 # 8

    key = jax.random.PRNGKey(0)
    kx, k1, k2, k3, k4 = jax.random.split(key, 5)
    x = jax.random.normal(kx, (B, C, H, W), dtype=jnp.float32)
    w1 = jax.random.normal(k1, (hidden, C), dtype=jnp.float32) * 0.1
    b1 = jax.random.normal(k2, (hidden,), dtype=jnp.float32) * 0.1
    w2 = jax.random.normal(k3, (C, hidden), dtype=jnp.float32) * 0.1
    b2 = jax.random.normal(k4, (C,), dtype=jnp.float32) * 0.1

    ref = reference(x, w1, b1, w2, b2)

    # Fused single-pass path (default: x read once, written once).
    out_fused = jax.block_until_ready(squeeze_excitation(x, w1, b1, w2, b2))
    assert out_fused.shape == (B, C, H, W)
    assert jnp.allclose(out_fused, ref, atol=1e-4, rtol=1e-4), "fused path mismatch"

    # Two-pass fallback path (tiled pool + XLA FC + tiled apply), forced with HW tiling
    # to exercise the resident-accumulator reduction.
    out_two = jax.block_until_ready(
        squeeze_excitation(x, w1, b1, w2, b2, force_two_pass=True, hw_tile=128))
    assert jnp.allclose(out_two, ref, atol=1e-4, rtol=1e-4), "two-pass path mismatch"

    print("KERNEL_OK")
</pallas_src>

<mosaic_0001>
module attributes {stable_mosaic.version = 11 : i64} {
  func.func @se_fused_kernel(%arg0: i32, %arg1: memref<1x64x256xf32, #tpu.memory_space<vmem>>, %arg2: memref<64x8xf32, #tpu.memory_space<vmem>>, %arg3: memref<1x8xf32, #tpu.memory_space<vmem>>, %arg4: memref<8x64xf32, #tpu.memory_space<vmem>>, %arg5: memref<1x64xf32, #tpu.memory_space<vmem>>, %arg6: memref<1x64x256xf32, #tpu.memory_space<vmem>>) attributes {dimension_semantics = [#tpu.dimension_semantics<parallel>], iteration_bounds = array<i64: 2>, scalar_prefetch = 0 : i64, scratch_operands = 0 : i64, tpu.core_type = #tpu.core_type<tc>, window_params = [{transform_indices = @transform_0, window_bounds = array<i64: 1, 64, 256>}, {pipeline_mode = #tpu.pipeline_mode<synchronous>, transform_indices = @transform_1, window_bounds = array<i64: 64, 8>}, {pipeline_mode = #tpu.pipeline_mode<synchronous>, transform_indices = @transform_2, window_bounds = array<i64: 1, 8>}, {pipeline_mode = #tpu.pipeline_mode<synchronous>, transform_indices = @transform_3, window_bounds = array<i64: 8, 64>}, {pipeline_mode = #tpu.pipeline_mode<synchronous>, transform_indices = @transform_4, window_bounds = array<i64: 1, 64>}, {transform_indices = @transform_5, window_bounds = array<i64: 1, 64, 256>}]} {
    %c0 = arith.constant 0 : index
    %c0_0 = arith.constant 0 : index
    %c0_1 = arith.constant 0 : index
    %0 = vector.load %arg1[%c0, %c0_0, %c0_1] : memref<1x64x256xf32, #tpu.memory_space<vmem>>, vector<1x64x256xf32>
    %cst = arith.constant dense<0.000000e+00> : vector<1x64xf32>
    %1 = vector.multi_reduction <add>, %0, %cst [2] : vector<1x64x256xf32> to vector<1x64xf32>
    %c0_2 = arith.constant 0 : index
    %c0_3 = arith.constant 0 : index
    %2 = vector.load %arg2[%c0_2, %c0_3] : memref<64x8xf32, #tpu.memory_space<vmem>>, vector<64x8xf32>
    %cst_4 = arith.constant dense<0.000000e+00> : vector<1x8xf32>
    %3 = tpu.matmul %1, %2, %cst_4 {dimension_numbers = #tpu.dot_dimension_numbers<[1], [0], [0], [1], [0, 0, 1, 1], [], []>} : vector<1x64xf32>, vector<64x8xf32>, vector<1x8xf32> -> vector<1x8xf32>
    %c0_5 = arith.constant 0 : index
    %c0_6 = arith.constant 0 : index
    %4 = vector.load %arg3[%c0_5, %c0_6] : memref<1x8xf32, #tpu.memory_space<vmem>>, vector<1x8xf32>
    %5 = arith.addf %3, %4 : vector<1x8xf32>
    %cst_7 = arith.constant 0.000000e+00 : f32
    %6 = vector.broadcast %cst_7 : f32 to vector<1x8xf32>
    %7 = arith.maximumf %5, %6 : vector<1x8xf32>
    %c0_8 = arith.constant 0 : index
    %c0_9 = arith.constant 0 : index
    %8 = vector.load %arg4[%c0_8, %c0_9] : memref<8x64xf32, #tpu.memory_space<vmem>>, vector<8x64xf32>
    %cst_10 = arith.constant dense<0.000000e+00> : vector<1x64xf32>
    %9 = tpu.matmul %7, %8, %cst_10 {dimension_numbers = #tpu.dot_dimension_numbers<[1], [0], [0], [1], [0, 0, 1, 1], [], []>} : vector<1x8xf32>, vector<8x64xf32>, vector<1x64xf32> -> vector<1x64xf32>
    %c0_11 = arith.constant 0 : index
    %c0_12 = arith.constant 0 : index
    %10 = vector.load %arg5[%c0_11, %c0_12] : memref<1x64xf32, #tpu.memory_space<vmem>>, vector<1x64xf32>
    %11 = arith.addf %9, %10 : vector<1x64xf32>
    %12 = arith.negf %11 : vector<1x64xf32>
    %13 = math.exp %12 : vector<1x64xf32>
    %cst_13 = arith.constant 1.000000e+00 : f32
    %14 = vector.broadcast %cst_13 : f32 to vector<1x64xf32>
    %15 = arith.addf %14, %13 : vector<1x64xf32>
    %16 = arith.divf %14, %15 : vector<1x64xf32>
    %c0_14 = arith.constant 0 : index
    %c0_15 = arith.constant 0 : index
    %c0_16 = arith.constant 0 : index
    %17 = vector.load %arg1[%c0_14, %c0_15, %c0_16] : memref<1x64x256xf32, #tpu.memory_space<vmem>>, vector<1x64x256xf32>
    %18 = vector.shape_cast %16 : vector<1x64xf32> to vector<1x64x1xf32>
    %19 = vector.broadcast %18 : vector<1x64x1xf32> to vector<1x64x256xf32>
    %20 = arith.mulf %17, %19 : vector<1x64x256xf32>
    %c0_17 = arith.constant 0 : index
    %c0_18 = arith.constant 0 : index
    %c0_19 = arith.constant 0 : index
    %21 = vector.load %arg6[%c0_17, %c0_18, %c0_19] : memref<1x64x256xf32, #tpu.memory_space<vmem>>, vector<1x64x256xf32>
    tpu.vector_store %arg6[%c0_17, %c0_18, %c0_19], %20 {strides = array<i32>} : memref<1x64x256xf32, #tpu.memory_space<vmem>>, vector<1x64x256xf32>,
    return
  }
  func.func @transform_0(%arg0: i32) -> (i32, i32, i32) {
    %c0_i32 = arith.constant 0 : i32
    %c0_i32_0 = arith.constant 0 : i32
    %c0_i32_1 = arith.constant 0 : i32
    return %arg0, %c0_i32, %c0_i32_0 : i32, i32, i32
  }
  func.func @transform_1(%arg0: i32) -> (i32, i32) {
    %c0_i32 = arith.constant 0 : i32
    %c0_i32_0 = arith.constant 0 : i32
    %c0_i32_1 = arith.constant 0 : i32
    return %c0_i32, %c0_i32_0 : i32, i32
  }
  func.func @transform_2(%arg0: i32) -> (i32, i32) {
    %c0_i32 = arith.constant 0 : i32
    %c0_i32_0 = arith.constant 0 : i32
    %c0_i32_1 = arith.constant 0 : i32
    return %c0_i32, %c0_i32_0 : i32, i32
  }
  func.func @transform_3(%arg0: i32) -> (i32, i32) {
    %c0_i32 = arith.constant 0 : i32
    %c0_i32_0 = arith.constant 0 : i32
    %c0_i32_1 = arith.constant 0 : i32
    return %c0_i32, %c0_i32_0 : i32, i32
  }
  func.func @transform_4(%arg0: i32) -> (i32, i32) {
    %c0_i32 = arith.constant 0 : i32
    %c0_i32_0 = arith.constant 0 : i32
    %c0_i32_1 = arith.constant 0 : i32
    return %c0_i32, %c0_i32_0 : i32, i32
  }
  func.func @transform_5(%arg0: i32) -> (i32, i32, i32) {
    %c0_i32 = arith.constant 0 : i32
    %c0_i32_0 = arith.constant 0 : i32
    %c0_i32_1 = arith.constant 0 : i32
    return %arg0, %c0_i32, %c0_i32_0 : i32, i32, i32
  }
}

</mosaic_0001>

<bundles_post_ra>
// kernel: tpu_custom_call.1
= control target key start
LH: loop header
LB: loop body
LE: loop exit
PB: predicated region body
PF: predicated region fallthrough
CT: control target
= control target key end

     0   :  { %10 = vsyncpa [#allocation3], 0  ;;  %s1033_s0 = inlined_call_operand.hbm [shape: f32[2,64,256], index: 0, kind: input, shape index: {}]   ;;  %s1034_s1 = inlined_call_operand.vmem [shape: f32[64,8], index: 1, kind: input, shape index: {}]   ;;  %s1035_s2 = inlined_call_operand.vmem [shape: f32[1,8], index: 2, kind: input, shape index: {}]   ;;  %s1036_s3 = inlined_call_operand.vmem [shape: f32[8,64], index: 3, kind: input, shape index: {}]   ;;  %s1037_s4 = inlined_call_operand.vmem [shape: f32[1,64], index: 4, kind: input, shape index: {}]   ;;  %s1038_s5 = inlined_call_operand.hbm [shape: f32[2,64,256], index: 5, kind: output, shape index: {}]  }
   0x1   :  { %12 = vsyncpa [#allocation3 + $0x1], 0 }
   0x2   :  { %13 = vsyncpa [#allocation4], 0 }
   0x3   :  { %15 = vsyncpa [#allocation4 + $0x1], 0  ;;  %s786_s18 = smov 0   ;;  %s788_s19 = smov 0  }
   0x4   :  { %s790_s20 = smov 0   ;;  %s792_s21 = smov 0  }
   0x5 LB: > { %s807_s22 = sadd.s32 4294967295, %s750_s21   ;;  %s572_s23 = sadd.s32 4294967294, %s750_s21   ;;  %s750_s21 = sphi %s792_s21, %s1048_s21   ;;  %s746_s20 = sphi %s790_s20, %s1047_s20   ;;  %s742_s19 = sphi %s788_s19, %s1046_s19   ;;  %s738_s18 = sphi %s786_s18, %s1045_s18  }
   0x6   : > { %s811_s24 = sadd.s32 1, %s750_s21   ;;  %s28_s25 = sadd.s32 1, %s746_s20 }
   0x7   : > { %s25_s26 = ssub.s32 %s750_s21, %s811_s24  ;;  %p35_p0 = scmp.ne.s32.totalorder %s746_s20, %s742_s19 }
   0x8   : > { %p26_p1 = scmp.eq.s32.totalorder %s25_s26, 0  ;;  %p36_p2 = scmp.eq.s32.totalorder %s750_s21, 0 }
   0x9   : > { %p41_p3 = scmp.ne.s32.totalorder %s742_s19, %s738_s18  ;;  %p42_p4 = scmp.eq.s32.totalorder %s807_s22, 0 }
   0xa   : > { %s823_s27 = scalar_select %p26_p1, %s746_s20, %s28_s25  }
   0xb   : > { %p825_p5 = por %p36_p2, %p35_p0  ;;  %p829_p6 = por %p42_p4, %p41_p3 }
   0xc   : > { %p149_p7 = scmp.eq.s32.totalorder %s807_s22, 1  ;;  %p155_p8 = scmp.eq.s32.totalorder %s572_s23, 1 }
   0xd   : > { %p603_p10 = scmp.lt.s32.totalorder %s750_s21, 2  ;;  %s187_s7 = sand.u32 1, %s746_s20  }
   0xe   : > { %p836_p11 = por %p149_p7, %p35_p0  ;;  %p840_p12 = por %p155_p8, %p41_p3 }
   0xf   : > { %s589_s8 = sshll.u32 %s750_s21, 7  ;;  %s575_s9 = sshll.u32 %s187_s7, 7 }
  0x10   : > { %s196_s12 = scalar_lea.hbm %s1033_s0, %s589_s8  ;;  %s191_s14 = scalar_lea.vmem [#allocation2], %s575_s9 }
  0x11   : > { %s197_s13 = sshll.u32 %s196_s12, 4  ;;  %s199_s15 = sshll.u32 %s191_s14, 4  ;;  %s198_s13 = int_to_ptr.hbm [resolvable:$true] %s197_s13  ;;  %s200_s15 = int_to_ptr.vmem [resolvable:$true] %s199_s15 }
  0x12   : > { %p851_p13 = pnand %p603_p10, %p825_p5  ;;  %p578_p0 = scmp.ge.s32.totalorder %s750_s21, 1 }
  0x13   : > { %p207_p1 = scmp.lt.s32.totalorder %s750_s21, 3  ;;  %s188_s17 = scalar_lea.sflag [#allocation3], %s187_s7 }
  0x14   : > { %s654_s23 = sshra.s32 %s198_s13, 4  ;;  %p658_p3 = pneg %p851_p13  ;;  %s655_s23 = int_to_ptr.hbm [resolvable:$true] %s654_s23 }
  0x15   : > { %s656_s25 = scalar_lea.hbm %s655_s23, 128  ;;  %s661_s28 = scalar_lea.hbm %s1033_s0, 256 }
  0x16   : > { %p657_p2 = scmp.ne.s32.totalorder %s655_s23, %s656_s25  ;;  %p662_p5 = scmp.lt.s32.totalorder %s655_s23, %s1033_s0 }
  0x17   : > { %p663_p8 = scmp.lt.s32.totalorder %s661_s28, %s656_s25 }
  0x18   : > { %p659_p4 = pnand %p658_p3, %p657_p2 }
  0x19   : > { %p664_p10 = por %p663_p8, %p662_p5 }
  0x1a   : > { %p660_p7 = pneg %p659_p4 }
  0x1c   : > { %p665_p9 = pnand %p664_p10, %p660_p7 }
  0x1e   : > { %668 = shalt.err (!%p665_p9)
}
  0x1f   : > { %s752_s7 = smov 256   ;;  %s753_s11 = smov 16  }
  0x20   : > { %598 = dma.hbm_to_vmem [thread:$0]  (!%p851_p13), %s198_s13, 2048, %s200_s15, %s188_s17, %s752_s7, %s752_s7, %s753_s11  }
  0x21   : > { %p208_p2 = pnand %p578_p0, %p207_p1 }
  0x22   : > { %s872_s12 = sand.u32 (!%p208_p2), 1, %s742_s19  }
  0x23   : > { %211 = sbr.rel (%p208_p2) target bundleno = 622 (0x26e), region = 40  ;;  %s579_s14 = sshll.u32 (!%p208_p2), %s872_s12, 7 }
  0x24   : > { %s214_s23 = scalar_lea.sflag (!%p208_p2), [#allocation3], %s872_s12  ;;  %s217_s25 = scalar_lea.vmem (!%p208_p2), [#allocation2], %s579_s14 }
  0x28   : > { %729 = dma.done.wait (%p829_p6), %s214_s23, 2048  }
  0x29   : > { %731 = vsyncadd (%p829_p6), %s214_s23, 4294965248  ;;  %v882_v0 = vld [vmem:[%s217_s25] sm:$0xff]  ;;  %v884_v1 = vld [vmem:[%s217_s25 + $0x8] sm:$0xff]  ;;  %v302_v32 = vlaneseq  ;;  %vm307_vm0 = vcmask 130112   ;;  %vm311_vm1 = vcmask 195712   ;;  %vm315_vm2 = vcmask 261312  }
  0x2a   : > { %v886_v2 = vld [vmem:[%s217_s25 + $0x20] sm:$0xff]  ;;  %v261_v3 = vadd.f32 %v884_v1, %v882_v0  ;;  %v890_v4 = vld [vmem:[%s217_s25 + $0x28] sm:$0xff]  ;;  %v900_v9 = vld [vmem:[%s217_s25 + $0x10] sm:$0xff]  ;;  %vm319_vm3 = vcmask 326912   ;;  %vm323_vm4 = vcmask 392512   ;;  %vm327_vm5 = vcmask 458112  }
  0x2b   : > { %v892_v5 = vld [vmem:[%s217_s25 + $0x40] sm:$0xff]  ;;  %v894_v6 = vld [vmem:[%s217_s25 + $0x48] sm:$0xff]  ;;  %v267_v7 = vadd.f32 %v890_v4, %v886_v2  ;;  %v902_v10 = vld [vmem:[%s217_s25 + $0x18] sm:$0xff]  ;;  %v303_v36 = vand.u32 127, %v302_v32  ;;  %vm331_vm6 = vcmask 523712   ;;  %vm333_vm7 = vcmask 523264  }
  0x2c   : > { %v273_v8 = vadd.f32 %v894_v6, %v892_v5  ;;  %262 = vadd.xlane.f32.xlu0 %v261_v3  ;;  %v904_v11 = vld [vmem:[%s217_s25 + $0x30] sm:$0xff]  ;;  %v906_v12 = vld [vmem:[%s217_s25 + $0x38] sm:$0xff]  ;;  %v264_v15 = vadd.f32 %v902_v10, %v900_v9  ;;  %v918_v18 = vld [vmem:[%s217_s25 + $0x60] sm:$0xff]  ;;  %vm359_vm8 = vcmask 64512   ;;  %s967_s9 = scalar_lea.vmem [#allocation5], %s579_s14  ;;  %s590_s14 = sshll.u32 %s807_s22, 7 }
  0x2d   : > { %268 = vadd.xlane.f32.xlu1 %v267_v7  ;;  %v908_v13 = vld [vmem:[%s217_s25 + $0x50] sm:$0xff]  ;;  %v910_v14 = vld [vmem:[%s217_s25 + $0x58] sm:$0xff]  ;;  %v270_v16 = vadd.f32 %v906_v12, %v904_v11  ;;  %v920_v19 = vld [vmem:[%s217_s25 + $0x68] sm:$0xff]  ;;  %v305_v37 = vadd.s32 4294967288, %v303_v36  ;;  %v309_v38 = vadd.s32 4294967280, %v303_v36  ;;  %v313_v39 = vadd.s32 4294967272, %v303_v36  ;;  %s495_s11 = scalar_lea.hbm %s1038_s5, %s590_s14 }
  0x2e   : > { %274 = vadd.xlane.f32.xlu2 %v273_v8  ;;  %v276_v17 = vadd.f32 %v910_v14, %v908_v13  ;;  %v922_v20 = vld [vmem:[%s217_s25 + $0x70] sm:$0xff]  ;;  %v924_v21 = vld [vmem:[%s217_s25 + $0x78] sm:$0xff]  ;;  %v279_v22 = vadd.f32 %v920_v19, %v918_v18  ;;  %v290_v26 = vld [vmem:[%s1034_s1 + $0x28] sm:$0xff]  ;;  %v317_v42 = vadd.s32 4294967264, %v303_v36  ;;  %v321_v47 = vadd.s32 4294967256, %v303_v36  ;;  %s496_s23 = sshll.u32 %s967_s9, 4  ;;  %s497_s23 = int_to_ptr.vmem [resolvable:$true] %s496_s23 }
  0x2f   : > { %v282_v23 = vadd.f32 %v924_v21, %v922_v20  ;;  %v292_v24 = vld [vmem:[%s1034_s1 + $0x38] sm:$0xff]  ;;  %v291_v25 = vld [vmem:[%s1034_s1 + $0x30] sm:$0xff]  ;;  %v289_v27 = vld [vmem:[%s1034_s1 + $0x20] sm:$0xff]  ;;  %v325_v53 = vadd.s32 4294967248, %v303_v36  ;;  %v329_v55 = vadd.s32 4294967240, %v303_v36  ;;  %s498_s25 = sshll.u32 %s495_s11, 4  ;;  %s499_s25 = int_to_ptr.hbm [resolvable:$true] %s498_s25 }
  0x30   : > { %344 = vmatpush.msra.mxu0 %v292_v24  ;;  %v288_v28 = vld [vmem:[%s1034_s1 + $0x18] sm:$0xff]  ;;  %v287_v29 = vld [vmem:[%s1034_s1 + $0x10] sm:$0xff]  ;;  %v286_v30 = vld [vmem:[%s1034_s1 + $0x8] sm:$0xff]  ;;  %s484_s22 = scalar_lea.sflag [#allocation4], %s872_s12  ;;  %s698_s29 = sshra.s32 %s499_s25, 4  ;;  %s699_s29 = int_to_ptr.hbm [resolvable:$true] %s698_s29 }
  0x31   : > { %v285_v31 = vld [vmem:[%s1034_s1] sm:$0xff]  ;;  %s700_s13 = scalar_lea.hbm %s699_s29, 128  ;;  %s704_s17 = scalar_lea.hbm %s1038_s5, 256 }
  0x32   : > { %345 = vmatpush.msra.mxu0 %v291_v25  ;;  %v357_v3 = vld [vmem:[%s1036_s3] sm:$0xff]  ;;  %p701_p6 = scmp.ne.s32.totalorder %s699_s29, %s700_s13  ;;  %p705_p0 = scmp.lt.s32.totalorder %s699_s29, %s1038_s5 }
  0x33   : > { %378 = vmatpush.msra.mxu1 %v357_v3  ;;  %v293_v7 = vld [vmem:[%s1035_s2] sm:$0x1]  ;;  %p706_p1 = scmp.lt.s32.totalorder %s704_s17, %s700_s13 }
  0x34   : > { %265 = vadd.xlane.f32.xlu0 %v264_v15  ;;  %346 = vmatpush.msra.mxu0 %v290_v26  ;;  %v358_v24 = vld [vmem:[%s1037_s4] sm:$0x1]  ;;  %p702_p9 = pnand %p701_p6, %p836_p11 }
  0x35   : > { %271 = vadd.xlane.f32.xlu1 %v270_v16  ;;  %p707_p3 = por %p706_p1, %p705_p0 }
  0x36   : > { %277 = vadd.xlane.f32.xlu2 %v276_v17  ;;  %347 = vmatpush.msra.mxu0 %v289_v27  ;;  %v404_v17 = vshrl.u32 %v302_v32, 7  ;;  %p703_p13 = pneg %p702_p9 }
  0x38   : > { %348 = vmatpush.msra.mxu0 %v288_v28  ;;  %641 = vset.pattern.permute.xlu2 %v404_v17  ;;  %p708_p4 = pnand %p707_p3, %p703_p13 }
  0x3a   : > { %349 = vmatpush.msra.mxu0 %v287_v29 }
  0x3c   : > { %280 = vadd.xlane.f32.xlu0 %v279_v22  ;;  %350 = vmatpush.msra.mxu0 %v286_v30  ;;  %v417_v22 = vadd.s32 16, %v404_v17 }
  0x3d   : > { %283 = vadd.xlane.f32.xlu1 %v282_v23  ;;  %v411_v23 = vadd.s32 8, %v404_v17 }
  0x3e   : > { %351 = vmatpush.msra.mxu0 %v285_v31  ;;  %643 = vset.pattern.permute.xlu1 %v417_v22 }
  0x3f   : > { %642 = vset.pattern.permute.xlu0 %v411_v23 }
  0x9f   : > { %v263_v33 = vpop.xlane.xlu0 %262 }
  0xa0   : > { %v269_v34 = vpop.xlane.xlu1 %268  ;;  %v304_v41 = vperm.slane %v263_v33, %v303_v36 }
  0xa1   : > { %v275_v35 = vpop.xlane.xlu2 %274  ;;  %v310_v45 = vperm.slane %v269_v34, %v309_v38 }
  0xa2   : > { %v318_v51 = vperm.slane %v275_v35, %v317_v42  ;;  %v423_v42 = vadd.s32 24, %v404_v17 }
  0xa7   : > { %v266_v40 = vpop.xlane.xlu0 %265 }
  0xa8   : > { %v306_v43 = vperm.slane %v266_v40, %v305_v37  ;;  %v272_v44 = vpop.xlane.xlu1 %271 }
  0xa9   : > { %v314_v46 = vperm.slane %v272_v44, %v313_v39  ;;  %v278_v49 = vpop.xlane.xlu2 %277  ;;  %v429_v44 = vadd.s32 32, %v404_v17 }
  0xaa   : > { %v308_v48 = vsel %vm307_vm0, %v306_v43, %v304_v41  ;;  %v322_v54 = vperm.slane %v278_v49, %v321_v47  ;;  %v435_v41 = vadd.s32 40, %v404_v17  ;;  %v447_v43 = vadd.s32 56, %v404_v17 }
  0xab   : > { %v312_v50 = vsel %vm311_vm1, %v310_v45, %v308_v48  ;;  %v441_v45 = vadd.s32 48, %v404_v17 }
  0xac   : > { %v316_v52 = vsel %vm315_vm2, %v314_v46, %v312_v50 }
  0xad   : > { %v320_v56 = vsel %vm319_vm3, %v318_v51, %v316_v52 }
  0xae   : > { %v324_v60 = vsel %vm323_vm4, %v322_v54, %v320_v56 }
  0xaf   : > { %v281_v57 = vpop.xlane.xlu0 %280 }
  0xb0   : > { %v326_v58 = vperm.slane %v281_v57, %v325_v53  ;;  %v284_v59 = vpop.xlane.xlu1 %283 }
  0xb1   : > { %v330_v61 = vperm.slane %v284_v59, %v329_v55 }
  0xb2   : > { %v328_v62 = vsel %vm327_vm5, %v326_v58, %v324_v60 }
  0xb3   : > { %v332_v63 = vsel %vm331_vm6, %v330_v61, %v328_v62 }
  0xb4   : > { %581 = vmatmul.msk.f32.vlgmr.msra.gmra.mxu0 %vm333_vm7, %v332_v63 }
 0x131   : > { %v353_v8 = vpop.f32.mrf.mxu0 }
 0x132   : > { %v354_v15 = vadd.f32 %v353_v8, %v293_v7 }
 0x134   : > { %v356_v16 = vmax.f32 %v354_v15, 0.0 }
 0x136   : > { %582 = vmatmul.msk.f32.vlgmr.msra.gmra.mxu1 %vm359_vm8, %v356_v16 }
 0x1b3   : > { %v380_v25 = vpop.f32.mrf.mxu1 }
 0x1b4   : > { %v381_v26 = vadd.f32 %v380_v25, %v358_v24 }
 0x1b6   : > { %v583_v27 = vmul.f32 -1.442695, %v381_v26 }
 0x1b8   : > { %650 = vpow2.f32 %v583_v27 }
 0x1be   : > { %v651_v28 = vpop.eup %650 }
 0x1bf   : > { %v386_v29 = vadd.f32 1.0, %v651_v28 }
 0x1c1   : > { %652 = vrcp.f32 %v386_v29  ;;  %v398_v32 = vand.u32 2147483648, %v386_v29  ;;  %v396_v35 = vand.u32 2147483647, %v386_v29  ;;  %vm392_vm10 = vweird.f32 %v386_v29 }
 0x1c3   : > { %v399_v37 = vor.u32 1.1754944e-38, %v398_v32  ;;  %vm397_vm12 = vcmp.eq.f32.partialorder %v396_v35, 8.507059e+37 }
 0x1c7   : > { %v653_v30 = vpop.eup %652 }
 0x1c8   : > { %v388_v31 = vmul.f32 %v653_v30, %v386_v29  ;;  %vm393_vm9 = vweird.f32 %v653_v30 }
 0x1c9   : > { %vm394_vm11 = vmor %vm392_vm10, %vm393_vm9 }
 0x1ca   : > { %v389_v33 = vsub.f32 1.0, %v388_v31 }
 0x1cc   : > { %v390_v34 = vmul.f32 %v653_v30, %v389_v33 }
 0x1ce   : > { %v391_v36 = vadd.f32 %v653_v30, %v390_v34 }
 0x1d0   : > { %v395_v38 = vsel %vm394_vm11, %v653_v30, %v391_v36 }
 0x1d1   : > { %v400_v39 = vsel %vm397_vm12, %v399_v37, %v395_v38 }
 0x1d2   : > { %v402_v40 = vperm.slane %v400_v39, 0 }
 0x1d4   : > { %419 = vperm.xlu1 %643, %v402_v40   ;;  %413 = vperm.xlu0 %642, %v402_v40  }
 0x1d5   : > { %407 = vperm.xlu2 %641, %v402_v40  }
 0x1dc   : > { %646 = vset.pattern.permute.xlu1 %v435_v41  ;;  %649 = vset.pattern.permute.xlu0 %v447_v43 }
 0x1dd   : > { %644 = vset.pattern.permute.xlu2 %v423_v42 }
 0x1e4   : > { %437 = vperm.xlu1 %646, %v402_v40  }
 0x1e5   : > { %425 = vperm.xlu2 %644, %v402_v40  }
 0x1ec   : > { %648 = vset.pattern.permute.xlu1 %v447_v43 }
 0x1ed   : > { %645 = vset.pattern.permute.xlu2 %v429_v44 }
 0x1f4   : > { %449 = vperm.xlu1 %648, %v402_v40  }
 0x1f5   : > { %431 = vperm.xlu2 %645, %v402_v40  }
 0x1fd   : > { %647 = vset.pattern.permute.xlu2 %v441_v45 }
 0x205   : > { %443 = vperm.xlu2 %647, %v402_v40  }
 0x22f   : > { %v408_v46 = vpop.permute.xlu2 %407 }
 0x230   : > { %v451_v47 = vmul.f32 %v408_v46, %v882_v0  ;;  %v452_v48 = vmul.f32 %v408_v46, %v884_v1 }
 0x232   : > { %467 = vst [vmem:[%s967_s9] sm:$0xff] %v451_v47 }
 0x233   : > { %468 = vst [vmem:[%s967_s9 + $0x8] sm:$0xff] %v452_v48 }
 0x23f   : > { %v426_v49 = vpop.permute.xlu2 %425 }
 0x240   : > { %v457_v50 = vmul.f32 %v426_v49, %v904_v11  ;;  %v458_v0 = vmul.f32 %v426_v49, %v906_v12 }
 0x242   : > { %473 = vst [vmem:[%s967_s9 + $0x30] sm:$0xff] %v457_v50 }
 0x243   : > { %474 = vst [vmem:[%s967_s9 + $0x38] sm:$0xff] %v458_v0 }
 0x246   : > { %v420_v1 = vpop.permute.xlu1 %419  ;;  %v414_v51 = vpop.permute.xlu0 %413 }
 0x247   : > { %v455_v52 = vmul.f32 %v420_v1, %v886_v2  ;;  %v456_v53 = vmul.f32 %v420_v1, %v890_v4  ;;  %v453_v54 = vmul.f32 %v414_v51, %v900_v9  ;;  %v454_v55 = vmul.f32 %v414_v51, %v902_v10 }
 0x249   : > { %471 = vst [vmem:[%s967_s9 + $0x20] sm:$0xff] %v455_v52 }
 0x24a   : > { %472 = vst [vmem:[%s967_s9 + $0x28] sm:$0xff] %v456_v53 }
 0x24b   : > { %469 = vst [vmem:[%s967_s9 + $0x10] sm:$0xff] %v453_v54 }
 0x24c   : > { %470 = vst [vmem:[%s967_s9 + $0x18] sm:$0xff] %v454_v55 }
 0x24f   : > { %v432_v11 = vpop.permute.xlu2 %431 }
 0x250   : > { %v459_v12 = vmul.f32 %v432_v11, %v892_v5  ;;  %v460_v2 = vmul.f32 %v432_v11, %v894_v6 }
 0x252   : > { %475 = vst [vmem:[%s967_s9 + $0x40] sm:$0xff] %v459_v12 }
 0x253   : > { %476 = vst [vmem:[%s967_s9 + $0x48] sm:$0xff] %v460_v2 }
 0x256   : > { %v438_v4 = vpop.permute.xlu1 %437 }
 0x257   : > { %v461_v9 = vmul.f32 %v438_v4, %v908_v13  ;;  %v462_v56 = vmul.f32 %v438_v4, %v910_v14 }
 0x259   : > { %477 = vst [vmem:[%s967_s9 + $0x50] sm:$0xff] %v461_v9 }
 0x25a   : > { %478 = vst [vmem:[%s967_s9 + $0x58] sm:$0xff] %v462_v56 }
 0x25f   : > { %v444_v10 = vpop.permute.xlu2 %443 }
 0x260   : > { %v463_v57 = vmul.f32 %v444_v10, %v918_v18  ;;  %v464_v5 = vmul.f32 %v444_v10, %v920_v19 }
 0x262   : > { %479 = vst [vmem:[%s967_s9 + $0x60] sm:$0xff] %v463_v57 }
 0x263   : > { %480 = vst [vmem:[%s967_s9 + $0x68] sm:$0xff] %v464_v5 }
 0x266   : > { %v450_v6 = vpop.permute.xlu1 %449 }
 0x267   : > { %v465_v13 = vmul.f32 %v450_v6, %v922_v20  ;;  %v466_v14 = vmul.f32 %v450_v6, %v924_v21 }
 0x269   : > { %481 = vst [vmem:[%s967_s9 + $0x70] sm:$0xff] %v465_v13 }
 0x26a   : > { %482 = vst [vmem:[%s967_s9 + $0x78] sm:$0xff] %v466_v14 }
 0x26b   : > { %711 = shalt.err (!%p708_p4)
}
 0x26c   : > { %s754_s12 = smov 256   ;;  %s755_s28 = smov 16  }
 0x26d   : > { %593 = dma.vmem_to_hbm [thread:$0]  (%p836_p11), %s497_s23, 2048, %s499_s25, %s484_s22, %s754_s12, %s754_s12, %s755_s28  }
 0x26e PF: > { %s513_s9 = sand.u32 1, %s738_s18   ;;  %p1044_p7 = scmp.ge.s32.totalorder %s750_s21, 2 }
 0x26f   : > { %s514_s14 = scalar_lea.sflag [#allocation4], %s513_s9 }
 0x270   : > { %p600_p5 = pnand %p1044_p7, %p840_p12 }
 0x272   : > { %p601_p8 = pneg %p600_p5 }
 0x274   : > { %733 = dma.done.wait (%p601_p8), %s514_s14, 2048  }
 0x275   : > { %735 = vsyncadd (%p601_p8), %s514_s14, 4294965248  ;;  %p18_p10 = scmp.ge.s32.totalorder %s811_s24, 4   ;;  %s1045_s18 = smov %s742_s19 }
 0x276   : > { %s1046_s19 = smov %s746_s20  ;;  %s1047_s20 = smov %s823_s27 }
 0x277   : > { %s1048_s21 = smov %s811_s24  ;;  %20 = sbr.rel (!%p18_p10) target bundleno = 5 (0x5), region = 85 }
 0x27c   :  { %520 = vsyncpa [#allocation3], 1 }
 0x27d   :  { %522 = vsyncpa [#allocation3 + $0x1], 1 }
 0x27e   :  { %523 = vsyncpa [#allocation4], 1 }
 0x27f   :  { %525 = vsyncpa [#allocation4 + $0x1], 1 }

</bundles_post_ra>
